<compile_context>
chip_gen: v6e
topology: v6e:2x2x1
jax: 0.10.0
libtpu: 0.0.40
codegen_flags: <defaults>
</compile_context>

<pallas_src>
import functools
import math

import numpy as np
import jax
import jax.numpy as jnp
from jax.experimental import pallas as pl
from jax.experimental.pallas import tpu as pltpu

LANE = 128
SUBLANE = 8


# ---------------------------------------------------------------------------
# Synthetic Metric: Cl(2,0) geometric algebra, basis [1, e1, e2, e12] (dim=4)
# ---------------------------------------------------------------------------
def make_cl20_geometric_product():
    # GP[i, j, k] = coefficient of basis_k in (basis_i * basis_j)
    table = {
        (0, 0): (0, 1.0), (0, 1): (1, 1.0), (0, 2): (2, 1.0), (0, 3): (3, 1.0),
        (1, 0): (1, 1.0), (1, 1): (0, 1.0), (1, 2): (3, 1.0), (1, 3): (2, 1.0),
        (2, 0): (2, 1.0), (2, 1): (3, -1.0), (2, 2): (0, 1.0), (2, 3): (1, -1.0),
        (3, 0): (3, 1.0), (3, 1): (2, -1.0), (3, 2): (1, 1.0), (3, 3): (0, -1.0),
    }
    gp = np.zeros((4, 4, 4), dtype=np.float32)
    for (i, j), (k, s) in table.items():
        gp[i, j, k] = s
    return gp


def _round_up(n, m):
    return ((n + m - 1) // m) * m


# ---------------------------------------------------------------------------
# Pallas kernel: one grid step = (batch b, output-depth tile t).
#   x_ref : (Rp_ext, Wp*cin_eff)           rows = fused (padded-d * Hp + padded-h)
#   w_ref : (Kd, Kh, Wp*cin_eff, cN_pad)   GP-folded, Kw-banded weights
#   b_ref : (1, cN_pad) f32                bias tiled over output-w columns
#   o_ref : (r_tile, cN_pad)               rows = fused (out-d, padded-h)
# ---------------------------------------------------------------------------
def _gpconv3d_kernel(x_ref, w_ref, b_ref, o_ref, *, Kd, Kh, Hp, r_tile):
    t = pl.program_id(1)
    r0 = t * r_tile
    if r_tile % SUBLANE == 0:
        r0 = pl.multiple_of(r0, SUBLANE)

    # Kd*Kh taps: each LHS is a contiguous row-window *view* of the x slab
    # (no im2col copies); the Kw tap lives inside the banded weight matrix.
    # Results accumulate in a register-resident f32 value.
    acc = None
    for m in range(Kd):
        for l in range(Kh):
            lhs = x_ref[pl.ds(r0 + m * Hp + l, r_tile), :]
            part = jnp.dot(lhs, w_ref[m, l], preferred_element_type=jnp.float32)
            acc = part if acc is None else acc + part

    # Single lane-dense store, bias folded in.
    o_ref[...] = (acc + b_ref[...]).astype(o_ref.dtype)


# ---------------------------------------------------------------------------
# Weight/bias folding (pure XLA glue).  In a real model this is recomputed
# only when the weights change, outside the per-call hot path.
#   g[m, l, w_in*cin_eff + (c*basis+j), w_out*cout_eff + (o*basis+k)]
#       = sum_i GP[i,j,k] * W[m, l, w_in - w_out, c, o, i]   (0 <= w_in-w_out < Kw)
# ---------------------------------------------------------------------------
def fold_gpconv3d_params(W, b, gp, Wp, Wo, cN_pad, compute_dtype):
    Kd, Kh, Kw, C, O, basis = W.shape
    cin_eff, cout_eff = C * basis, O * basis
    # GP fold: w_eff[m,l,v, c*basis+j, o*basis+k] = sum_i GP[i,j,k]*W[m,l,v,c,o,i]
    w_eff = jnp.einsum('ijk,mlvcoi->mlvcjok', gp, W).reshape(
        Kd, Kh, Kw, cin_eff, cout_eff)
    # Static band selector: band[w_in, w_out, v] = 1 iff w_in == w_out + v.
    band = np.zeros((Wp, Wo, Kw), np.float32)
    for wo in range(Wo):
        for v in range(Kw):
            band[wo + v, wo, v] = 1.0
    g = jnp.einsum('pqv,mlvio->mlpiqo', jnp.asarray(band), w_eff).reshape(
        Kd, Kh, Wp * cin_eff, Wo * cout_eff)
    g = jnp.pad(g, ((0, 0), (0, 0), (0, 0),
                    (0, cN_pad - Wo * cout_eff))).astype(compute_dtype)
    b_cols = jnp.tile(b.reshape(cout_eff), Wo)
    b_cols = jnp.pad(b_cols, (0, cN_pad - Wo * cout_eff)).reshape(1, cN_pad)
    return g, b_cols.astype(jnp.float32)


# ---------------------------------------------------------------------------
# Wrapper: layout conversion (glue) + Pallas call for the conv itself.
# ---------------------------------------------------------------------------
def gpconv3d(x, W, b, gp, *, stride=(1, 1, 1), padding=(1, 1, 1),
             d_tile=None, compute_dtype=jnp.bfloat16):
    # x : (B, Cin, basis, D, H, W); W : (Kd,Kh,Kw,Cin,Cout,basis)
    # b : (1, Cout, basis, 1, 1, 1); gp: (basis, basis, basis)
    if tuple(stride) != (1, 1, 1):
        raise NotImplementedError("gpconv3d Pallas kernel: only stride=(1,1,1)")
    B, C, basis, D, H, Wsp = x.shape
    Kd, Kh, Kw, _, O, _ = W.shape
    pd, ph, pw = padding

    Dp, Hp, Wp = D + 2 * pd, H + 2 * ph, Wsp + 2 * pw
    Do, Ho, Wo = Dp - Kd + 1, Hp - Kh + 1, Wp - Kw + 1
    cin_eff, cout_eff = C * basis, O * basis
    Cx = Wp * cin_eff                  # contraction size per (m,l) tap (all real)
    cN = Wo * cout_eff                 # real output columns
    cN_pad = _round_up(cN, LANE)       # lane-dense output width

    if d_tile is None:
        d_tile = Do
    if Do % d_tile != 0:
        raise ValueError(f"Do={Do} must be divisible by d_tile={d_tile}")
    n_dt = Do // d_tile
    r_tile = d_tile * Hp               # output rows per grid step (multiple of 8 here)

    cdt = np.dtype(compute_dtype)
    out_itemsize = cdt.itemsize

    Rp = Dp * Hp
    Rp_ext = _round_up(Rp + (Kh - 1), SUBLANE)   # tail rows so junk-h rows stay in bounds

    # --- weights / bias folding (GP product + Kw band), done outside the kernel
    w_col, b_cols = fold_gpconv3d_params(W, b, gp, Wp, Wo, cN_pad, cdt)

    # --- activations: channels-last (basis fused), spatial zero pad (ga_pad
    #     'constant'), then fuse (d,h) into rows and (w, cin) into columns.
    #     NO lane padding of the channel dim in HBM.
    x_cl = jnp.transpose(x, (0, 3, 4, 5, 1, 2)).reshape(
        B, D, H, Wsp, cin_eff).astype(cdt)
    x_cl = jnp.pad(x_cl, ((0, 0), (pd, pd), (ph, ph), (pw, pw), (0, 0)))
    xf = x_cl.reshape(B, Rp, Cx)
    xf = jnp.pad(xf, ((0, 0), (0, Rp_ext - Rp), (0, 0)))

    kernel = functools.partial(_gpconv3d_kernel, Kd=Kd, Kh=Kh, Hp=Hp,
                               r_tile=r_tile)

    # cost estimate on REAL (unpadded) work
    flops = 2 * B * Do * Ho * Wo * Kd * Kh * Kw * cin_eff * cout_eff
    bytes_accessed = (B * Rp_ext * Cx * cdt.itemsize
                      + Kd * Kh * Cx * cN_pad * cdt.itemsize
                      + cN_pad * 4
                      + B * n_dt * r_tile * cN_pad * out_itemsize)

    # vmem limit derived from actual block sizes (+ headroom), capped for v7x
    def _vmem_bytes(shape, itemsize):
        s = list(shape)
        s[-1] = _round_up(s[-1], LANE)
        if len(s) >= 2:
            s[-2] = _round_up(s[-2], SUBLANE)
        return int(np.prod(s)) * itemsize

    per_step = (_vmem_bytes((Rp_ext, Cx), cdt.itemsize)
                + _vmem_bytes((Kd, Kh, Cx, cN_pad), cdt.itemsize)
                + _vmem_bytes((1, cN_pad), 4)
                + _vmem_bytes((r_tile, cN_pad), out_itemsize))
    vmem_limit = int(min(64 * 2 ** 20, max(2 * per_step + (4 << 20), 16 << 20)))

    out = pl.pallas_call(
        kernel,
        out_shape=jax.ShapeDtypeStruct((B, n_dt, r_tile, cN_pad), cdt),
        grid_spec=pltpu.PrefetchScalarGridSpec(
            num_scalar_prefetch=0,
            grid=(B, n_dt),
            in_specs=[
                # whole (row-fused) padded volume per batch; index constant over
                # the depth-tile axis so it is re-DMA'd only per batch.
                pl.BlockSpec((None, Rp_ext, Cx), lambda bi, ti: (bi, 0, 0)),
                # banded weights VMEM-resident (constant index map).
                pl.BlockSpec((Kd, Kh, Cx, cN_pad), lambda bi, ti: (0, 0, 0, 0)),
                pl.BlockSpec((1, cN_pad), lambda bi, ti: (0, 0)),
            ],
            # lane-dense 2D output slab per grid step (rows % 8 == 0).
            out_specs=pl.BlockSpec((None, None, r_tile, cN_pad),
                                   lambda bi, ti: (bi, ti, 0, 0)),
        ),
        compiler_params=pltpu.CompilerParams(
            # batch axis parallel (megacore shards whole batches); depth-tile
            # axis arbitrary so both cores don't duplicate the per-batch x DMA.
            dimension_semantics=("parallel", "arbitrary"),
            vmem_limit_bytes=vmem_limit),
        cost_estimate=pl.CostEstimate(flops=flops, transcendentals=0,
                                      bytes_accessed=bytes_accessed),
    )(xf, w_col, b_cols)

    # (B, n_dt, r_tile, cN_pad) -> strip padded-h rows / padded cols ->
    # PyTorch layout (B, Cout, basis, Do, Ho, Wo)
    out = out.reshape(B, Do, Hp, cN_pad)[:, :, :Ho, :cN]
    out = out.reshape(B, Do, Ho, Wo, O, basis)
    return jnp.transpose(out, (0, 4, 5, 1, 2, 3)).astype(x.dtype)


# ---------------------------------------------------------------------------
# Pure-JAX reference (mirrors the torch einsum by linearity over kernel taps)
# ---------------------------------------------------------------------------
def gpconv3d_ref(x, W, b, gp, padding=(1, 1, 1)):
    B, C, basis, D, H, Wsp = x.shape
    Kd, Kh, Kw, _, O, _ = W.shape
    pd, ph, pw = padding
    xp = jnp.pad(x, ((0, 0), (0, 0), (0, 0), (pd, pd), (ph, ph), (pw, pw)))
    Do = D + 2 * pd - Kd + 1
    Ho = H + 2 * ph - Kh + 1
    Wo = Wsp + 2 * pw - Kw + 1
    out = jnp.zeros((B, O, basis, Do, Ho, Wo), x.dtype)
    for m in range(Kd):
        for l in range(Kh):
            for v in range(Kw):
                out = out + jnp.einsum(
                    'ijk,coi,bcjdhw->bokdhw',
                    gp, W[m, l, v], xp[..., m:m + Do, l:l + Ho, v:v + Wo])
    return out + b


if __name__ == "__main__":
    key = jax.random.PRNGKey(0)
    basis = 4
    B, Cin, Cout = 2, 2, 3
    D = H = Wsp = 6
    K = 3

    gp = jnp.asarray(make_cl20_geometric_product())

    k1, k2, k3 = jax.random.split(key, 3)
    # deterministic kaiming-style uniform init (synthetic, not a checkpoint)
    wbound = 1.0 / math.sqrt(Cin * K * K * K * basis)
    Wt = jax.random.uniform(k1, (K, K, K, Cin, Cout, basis), jnp.float32,
                            minval=-wbound, maxval=wbound)
    bias = jax.random.uniform(k2, (1, Cout, basis, 1, 1, 1), jnp.float32,
                              minval=-wbound, maxval=wbound)
    x = jax.random.normal(k3, (B, Cin, basis, D, H, Wsp), jnp.float32)

    ref = gpconv3d_ref(x, Wt, bias, gp, padding=(1, 1, 1))

    # f32-compute path with depth tiling (n_dt=2): wiring / layout check.
    out_f32 = gpconv3d(x, Wt, bias, gp, stride=(1, 1, 1), padding=(1, 1, 1),
                       d_tile=3, compute_dtype=jnp.float32)
    out_f32 = jax.block_until_ready(out_f32)
    assert out_f32.shape == (B, Cout, basis, D, H, Wsp), out_f32.shape
    np.testing.assert_allclose(np.asarray(out_f32), np.asarray(ref),
                               rtol=1e-3, atol=1e-3)

    # bf16-compute / f32-accumulate path (default tiling; looser tolerance).
    out_bf16 = gpconv3d(x, Wt, bias, gp, stride=(1, 1, 1), padding=(1, 1, 1))
    out_bf16 = jax.block_until_ready(out_bf16)
    assert out_bf16.shape == (B, Cout, basis, D, H, Wsp), out_bf16.shape
    np.testing.assert_allclose(np.asarray(out_bf16), np.asarray(ref),
                               rtol=3e-2, atol=3e-2)

    print("KERNEL_OK")
</pallas_src>

<mosaic_0001>
module attributes {stable_mosaic.version = 11 : i64} {
  func.func @_gpconv3d_kernel(%arg0: i32, %arg1: i32, %arg2: memref<1x72x64xf32, #tpu.memory_space<vmem>>, %arg3: memref<3x3x64x128xf32, #tpu.memory_space<vmem>>, %arg4: memref<1x128xf32, #tpu.memory_space<vmem>>, %arg5: memref<1x1x24x128xf32, #tpu.memory_space<vmem>>) attributes {dimension_semantics = [#tpu.dimension_semantics<parallel>, #tpu.dimension_semantics<arbitrary>], iteration_bounds = array<i64: 2, 2>, scalar_prefetch = 0 : i64, scratch_operands = 0 : i64, tpu.core_type = #tpu.core_type<tc>, window_params = [{transform_indices = @transform_0, window_bounds = array<i64: 1, 72, 64>}, {pipeline_mode = #tpu.pipeline_mode<synchronous>, transform_indices = @transform_1, window_bounds = array<i64: 3, 3, 64, 128>}, {pipeline_mode = #tpu.pipeline_mode<synchronous>, transform_indices = @transform_2, window_bounds = array<i64: 1, 128>}, {transform_indices = @transform_3, window_bounds = array<i64: 1, 1, 24, 128>}]} {
    %c24_i32 = arith.constant 24 : i32
    %0 = arith.muli %arg1, %c24_i32 : i32
    %1 = tpu.assume_multiple %0, 8 : i32
    %c0_i32 = arith.constant 0 : i32
    %2 = arith.addi %1, %c0_i32 : i32
    %c0_i32_0 = arith.constant 0 : i32
    %3 = arith.addi %2, %c0_i32_0 : i32
    %c0 = arith.constant 0 : index
    %4 = arith.index_cast %3 : i32 to index
    %c0_1 = arith.constant 0 : index
    %5 = vector.load %arg2[%c0, %4, %c0_1] : memref<1x72x64xf32, #tpu.memory_space<vmem>>, vector<1x24x64xf32>
    %6 = vector.shape_cast %5 : vector<1x24x64xf32> to vector<24x64xf32>
    %c0_2 = arith.constant 0 : index
    %c0_3 = arith.constant 0 : index
    %c0_4 = arith.constant 0 : index
    %c0_5 = arith.constant 0 : index
    %7 = vector.load %arg3[%c0_2, %c0_3, %c0_4, %c0_5] : memref<3x3x64x128xf32, #tpu.memory_space<vmem>>, vector<1x1x64x128xf32>
    %8 = vector.shape_cast %7 : vector<1x1x64x128xf32> to vector<64x128xf32>
    %cst = arith.constant dense<0.000000e+00> : vector<24x128xf32>
    %9 = tpu.matmul %6, %8, %cst {dimension_numbers = #tpu.dot_dimension_numbers<[1], [0], [0], [1], [0, 0, 1, 1], [], []>} : vector<24x64xf32>, vector<64x128xf32>, vector<24x128xf32> -> vector<24x128xf32>
    %c0_i32_6 = arith.constant 0 : i32
    %10 = arith.addi %1, %c0_i32_6 : i32
    %c1_i32 = arith.constant 1 : i32
    %11 = arith.addi %10, %c1_i32 : i32
    %c0_7 = arith.constant 0 : index
    %12 = arith.index_cast %11 : i32 to index
    %c0_8 = arith.constant 0 : index
    %13 = vector.load %arg2[%c0_7, %12, %c0_8] : memref<1x72x64xf32, #tpu.memory_space<vmem>>, vector<1x24x64xf32>
    %14 = vector.shape_cast %13 : vector<1x24x64xf32> to vector<24x64xf32>
    %c0_9 = arith.constant 0 : index
    %c1 = arith.constant 1 : index
    %c0_10 = arith.constant 0 : index
    %c0_11 = arith.constant 0 : index
    %15 = vector.load %arg3[%c0_9, %c1, %c0_10, %c0_11] : memref<3x3x64x128xf32, #tpu.memory_space<vmem>>, vector<1x1x64x128xf32>
    %16 = vector.shape_cast %15 : vector<1x1x64x128xf32> to vector<64x128xf32>
    %cst_12 = arith.constant dense<0.000000e+00> : vector<24x128xf32>
    %17 = tpu.matmul %14, %16, %cst_12 {dimension_numbers = #tpu.dot_dimension_numbers<[1], [0], [0], [1], [0, 0, 1, 1], [], []>} : vector<24x64xf32>, vector<64x128xf32>, vector<24x128xf32> -> vector<24x128xf32>
    %18 = arith.addf %9, %17 : vector<24x128xf32>
    %c0_i32_13 = arith.constant 0 : i32
    %19 = arith.addi %1, %c0_i32_13 : i32
    %c2_i32 = arith.constant 2 : i32
    %20 = arith.addi %19, %c2_i32 : i32
    %c0_14 = arith.constant 0 : index
    %21 = arith.index_cast %20 : i32 to index
    %c0_15 = arith.constant 0 : index
    %22 = vector.load %arg2[%c0_14, %21, %c0_15] : memref<1x72x64xf32, #tpu.memory_space<vmem>>, vector<1x24x64xf32>
    %23 = vector.shape_cast %22 : vector<1x24x64xf32> to vector<24x64xf32>
    %c0_16 = arith.constant 0 : index
    %c2 = arith.constant 2 : index
    %c0_17 = arith.constant 0 : index
    %c0_18 = arith.constant 0 : index
    %24 = vector.load %arg3[%c0_16, %c2, %c0_17, %c0_18] : memref<3x3x64x128xf32, #tpu.memory_space<vmem>>, vector<1x1x64x128xf32>
    %25 = vector.shape_cast %24 : vector<1x1x64x128xf32> to vector<64x128xf32>
    %cst_19 = arith.constant dense<0.000000e+00> : vector<24x128xf32>
    %26 = tpu.matmul %23, %25, %cst_19 {dimension_numbers = #tpu.dot_dimension_numbers<[1], [0], [0], [1], [0, 0, 1, 1], [], []>} : vector<24x64xf32>, vector<64x128xf32>, vector<24x128xf32> -> vector<24x128xf32>
    %27 = arith.addf %18, %26 : vector<24x128xf32>
    %c8_i32 = arith.constant 8 : i32
    %28 = arith.addi %1, %c8_i32 : i32
    %c0_i32_20 = arith.constant 0 : i32
    %29 = arith.addi %28, %c0_i32_20 : i32
    %c0_21 = arith.constant 0 : index
    %30 = arith.index_cast %29 : i32 to index
    %c0_22 = arith.constant 0 : index
    %31 = vector.load %arg2[%c0_21, %30, %c0_22] : memref<1x72x64xf32, #tpu.memory_space<vmem>>, vector<1x24x64xf32>
    %32 = vector.shape_cast %31 : vector<1x24x64xf32> to vector<24x64xf32>
    %c1_23 = arith.constant 1 : index
    %c0_24 = arith.constant 0 : index
    %c0_25 = arith.constant 0 : index
    %c0_26 = arith.constant 0 : index
    %33 = vector.load %arg3[%c1_23, %c0_24, %c0_25, %c0_26] : memref<3x3x64x128xf32, #tpu.memory_space<vmem>>, vector<1x1x64x128xf32>
    %34 = vector.shape_cast %33 : vector<1x1x64x128xf32> to vector<64x128xf32>
    %cst_27 = arith.constant dense<0.000000e+00> : vector<24x128xf32>
    %35 = tpu.matmul %32, %34, %cst_27 {dimension_numbers = #tpu.dot_dimension_numbers<[1], [0], [0], [1], [0, 0, 1, 1], [], []>} : vector<24x64xf32>, vector<64x128xf32>, vector<24x128xf32> -> vector<24x128xf32>
    %36 = arith.addf %27, %35 : vector<24x128xf32>
    %c8_i32_28 = arith.constant 8 : i32
    %37 = arith.addi %1, %c8_i32_28 : i32
    %c1_i32_29 = arith.constant 1 : i32
    %38 = arith.addi %37, %c1_i32_29 : i32
    %c0_30 = arith.constant 0 : index
    %39 = arith.index_cast %38 : i32 to index
    %c0_31 = arith.constant 0 : index
    %40 = vector.load %arg2[%c0_30, %39, %c0_31] : memref<1x72x64xf32, #tpu.memory_space<vmem>>, vector<1x24x64xf32>
    %41 = vector.shape_cast %40 : vector<1x24x64xf32> to vector<24x64xf32>
    %c1_32 = arith.constant 1 : index
    %c1_33 = arith.constant 1 : index
    %c0_34 = arith.constant 0 : index
    %c0_35 = arith.constant 0 : index
    %42 = vector.load %arg3[%c1_32, %c1_33, %c0_34, %c0_35] : memref<3x3x64x128xf32, #tpu.memory_space<vmem>>, vector<1x1x64x128xf32>
    %43 = vector.shape_cast %42 : vector<1x1x64x128xf32> to vector<64x128xf32>
    %cst_36 = arith.constant dense<0.000000e+00> : vector<24x128xf32>
    %44 = tpu.matmul %41, %43, %cst_36 {dimension_numbers = #tpu.dot_dimension_numbers<[1], [0], [0], [1], [0, 0, 1, 1], [], []>} : vector<24x64xf32>, vector<64x128xf32>, vector<24x128xf32> -> vector<24x128xf32>
    %45 = arith.addf %36, %44 : vector<24x128xf32>
    %c8_i32_37 = arith.constant 8 : i32
    %46 = arith.addi %1, %c8_i32_37 : i32
    %c2_i32_38 = arith.constant 2 : i32
    %47 = arith.addi %46, %c2_i32_38 : i32
    %c0_39 = arith.constant 0 : index
    %48 = arith.index_cast %47 : i32 to index
    %c0_40 = arith.constant 0 : index
    %49 = vector.load %arg2[%c0_39, %48, %c0_40] : memref<1x72x64xf32, #tpu.memory_space<vmem>>, vector<1x24x64xf32>
    %50 = vector.shape_cast %49 : vector<1x24x64xf32> to vector<24x64xf32>
    %c1_41 = arith.constant 1 : index
    %c2_42 = arith.constant 2 : index
    %c0_43 = arith.constant 0 : index
    %c0_44 = arith.constant 0 : index
    %51 = vector.load %arg3[%c1_41, %c2_42, %c0_43, %c0_44] : memref<3x3x64x128xf32, #tpu.memory_space<vmem>>, vector<1x1x64x128xf32>
    %52 = vector.shape_cast %51 : vector<1x1x64x128xf32> to vector<64x128xf32>
    %cst_45 = arith.constant dense<0.000000e+00> : vector<24x128xf32>
    %53 = tpu.matmul %50, %52, %cst_45 {dimension_numbers = #tpu.dot_dimension_numbers<[1], [0], [0], [1], [0, 0, 1, 1], [], []>} : vector<24x64xf32>, vector<64x128xf32>, vector<24x128xf32> -> vector<24x128xf32>
    %54 = arith.addf %45, %53 : vector<24x128xf32>
    %c16_i32 = arith.constant 16 : i32
    %55 = arith.addi %1, %c16_i32 : i32
    %c0_i32_46 = arith.constant 0 : i32
    %56 = arith.addi %55, %c0_i32_46 : i32
    %c0_47 = arith.constant 0 : index
    %57 = arith.index_cast %56 : i32 to index
    %c0_48 = arith.constant 0 : index
    %58 = vector.load %arg2[%c0_47, %57, %c0_48] : memref<1x72x64xf32, #tpu.memory_space<vmem>>, vector<1x24x64xf32>
    %59 = vector.shape_cast %58 : vector<1x24x64xf32> to vector<24x64xf32>
    %c2_49 = arith.constant 2 : index
    %c0_50 = arith.constant 0 : index
    %c0_51 = arith.constant 0 : index
    %c0_52 = arith.constant 0 : index
    %60 = vector.load %arg3[%c2_49, %c0_50, %c0_51, %c0_52] : memref<3x3x64x128xf32, #tpu.memory_space<vmem>>, vector<1x1x64x128xf32>
    %61 = vector.shape_cast %60 : vector<1x1x64x128xf32> to vector<64x128xf32>
    %cst_53 = arith.constant dense<0.000000e+00> : vector<24x128xf32>
    %62 = tpu.matmul %59, %61, %cst_53 {dimension_numbers = #tpu.dot_dimension_numbers<[1], [0], [0], [1], [0, 0, 1, 1], [], []>} : vector<24x64xf32>, vector<64x128xf32>, vector<24x128xf32> -> vector<24x128xf32>
    %63 = arith.addf %54, %62 : vector<24x128xf32>
    %c16_i32_54 = arith.constant 16 : i32
    %64 = arith.addi %1, %c16_i32_54 : i32
    %c1_i32_55 = arith.constant 1 : i32
    %65 = arith.addi %64, %c1_i32_55 : i32
    %c0_56 = arith.constant 0 : index
    %66 = arith.index_cast %65 : i32 to index
    %c0_57 = arith.constant 0 : index
    %67 = vector.load %arg2[%c0_56, %66, %c0_57] : memref<1x72x64xf32, #tpu.memory_space<vmem>>, vector<1x24x64xf32>
    %68 = vector.shape_cast %67 : vector<1x24x64xf32> to vector<24x64xf32>
    %c2_58 = arith.constant 2 : index
    %c1_59 = arith.constant 1 : index
    %c0_60 = arith.constant 0 : index
    %c0_61 = arith.constant 0 : index
    %69 = vector.load %arg3[%c2_58, %c1_59, %c0_60, %c0_61] : memref<3x3x64x128xf32, #tpu.memory_space<vmem>>, vector<1x1x64x128xf32>
    %70 = vector.shape_cast %69 : vector<1x1x64x128xf32> to vector<64x128xf32>
    %cst_62 = arith.constant dense<0.000000e+00> : vector<24x128xf32>
    %71 = tpu.matmul %68, %70, %cst_62 {dimension_numbers = #tpu.dot_dimension_numbers<[1], [0], [0], [1], [0, 0, 1, 1], [], []>} : vector<24x64xf32>, vector<64x128xf32>, vector<24x128xf32> -> vector<24x128xf32>
    %72 = arith.addf %63, %71 : vector<24x128xf32>
    %c16_i32_63 = arith.constant 16 : i32
    %73 = arith.addi %1, %c16_i32_63 : i32
    %c2_i32_64 = arith.constant 2 : i32
    %74 = arith.addi %73, %c2_i32_64 : i32
    %c0_65 = arith.constant 0 : index
    %75 = arith.index_cast %74 : i32 to index
    %c0_66 = arith.constant 0 : index
    %76 = vector.load %arg2[%c0_65, %75, %c0_66] : memref<1x72x64xf32, #tpu.memory_space<vmem>>, vector<1x24x64xf32>
    %77 = vector.shape_cast %76 : vector<1x24x64xf32> to vector<24x64xf32>
    %c2_67 = arith.constant 2 : index
    %c2_68 = arith.constant 2 : index
    %c0_69 = arith.constant 0 : index
    %c0_70 = arith.constant 0 : index
    %78 = vector.load %arg3[%c2_67, %c2_68, %c0_69, %c0_70] : memref<3x3x64x128xf32, #tpu.memory_space<vmem>>, vector<1x1x64x128xf32>
    %79 = vector.shape_cast %78 : vector<1x1x64x128xf32> to vector<64x128xf32>
    %cst_71 = arith.constant dense<0.000000e+00> : vector<24x128xf32>
    %80 = tpu.matmul %77, %79, %cst_71 {dimension_numbers = #tpu.dot_dimension_numbers<[1], [0], [0], [1], [0, 0, 1, 1], [], []>} : vector<24x64xf32>, vector<64x128xf32>, vector<24x128xf32> -> vector<24x128xf32>
    %81 = arith.addf %72, %80 : vector<24x128xf32>
    %c0_72 = arith.constant 0 : index
    %c0_73 = arith.constant 0 : index
    %82 = vector.load %arg4[%c0_72, %c0_73] : memref<1x128xf32, #tpu.memory_space<vmem>>, vector<1x128xf32>
    %83 = vector.broadcast %82 : vector<1x128xf32> to vector<24x128xf32>
    %84 = arith.addf %81, %83 : vector<24x128xf32>
    %c0_74 = arith.constant 0 : index
    %c0_75 = arith.constant 0 : index
    %c0_76 = arith.constant 0 : index
    %c0_77 = arith.constant 0 : index
    %85 = vector.load %arg5[%c0_74, %c0_75, %c0_76, %c0_77] : memref<1x1x24x128xf32, #tpu.memory_space<vmem>>, vector<1x1x24x128xf32>
    %86 = vector.shape_cast %85 : vector<1x1x24x128xf32> to vector<24x128xf32>
    %87 = vector.shape_cast %84 : vector<24x128xf32> to vector<1x1x24x128xf32>
    tpu.vector_store %arg5[%c0_74, %c0_75, %c0_76, %c0_77], %87 {strides = array<i32>} : memref<1x1x24x128xf32, #tpu.memory_space<vmem>>, vector<1x1x24x128xf32>,
    return
  }
  func.func @transform_0(%arg0: i32, %arg1: i32) -> (i32, i32, i32) {
    %c0_i32 = arith.constant 0 : i32
    %c0_i32_0 = arith.constant 0 : i32
    %c0_i32_1 = arith.constant 0 : i32
    return %arg0, %c0_i32, %c0_i32_0 : i32, i32, i32
  }
  func.func @transform_1(%arg0: i32, %arg1: i32) -> (i32, i32, i32, i32) {
    %c0_i32 = arith.constant 0 : i32
    %c0_i32_0 = arith.constant 0 : i32
    %c0_i32_1 = arith.constant 0 : i32
    %c0_i32_2 = arith.constant 0 : i32
    %c0_i32_3 = arith.constant 0 : i32
    return %c0_i32, %c0_i32_0, %c0_i32_1, %c0_i32_2 : i32, i32, i32, i32
  }
  func.func @transform_2(%arg0: i32, %arg1: i32) -> (i32, i32) {
    %c0_i32 = arith.constant 0 : i32
    %c0_i32_0 = arith.constant 0 : i32
    %c0_i32_1 = arith.constant 0 : i32
    return %c0_i32, %c0_i32_0 : i32, i32
  }
  func.func @transform_3(%arg0: i32, %arg1: i32) -> (i32, i32, i32, i32) {
    %c0_i32 = arith.constant 0 : i32
    %c0_i32_0 = arith.constant 0 : i32
    %c0_i32_1 = arith.constant 0 : i32
    return %arg0, %arg1, %c0_i32, %c0_i32_0 : i32, i32, i32, i32
  }
}

</mosaic_0001>

<bundles_post_ra>
// kernel: tpu_custom_call.1
= control target key start
LH: loop header
LB: loop body
LE: loop exit
PB: predicated region body
PF: predicated region fallthrough
CT: control target
= control target key end

     0   :  { %8 = vsyncpa [#allocation3], 0  ;;  %s2315_s0 = inlined_call_operand.vmem [shape: f32[2,72,64], index: 0, kind: input, shape index: {}]   ;;  %s2316_s1 = inlined_call_operand.hbm [shape: f32[3,3,64,128], index: 1, kind: input, shape index: {}]   ;;  %s2317_s2 = inlined_call_operand.vmem [shape: f32[1,128], index: 2, kind: input, shape index: {}]   ;;  %s2318_s3 = inlined_call_operand.hbm [shape: f32[2,2,24,128], index: 3, kind: output, shape index: {}]  }
   0x1   :  { %9 = vsyncpa [#allocation4], 0 }
   0x2   :  { %11 = vsyncpa [#allocation4 + $0x1], 0  ;;  %s1936_s12 = smov 0   ;;  %s1938_s13 = smov 0  }
   0x3   :  { %s1940_s14 = smov 0   ;;  %s1942_s15 = smov 0  }
   0x4   :  { %s1944_s16 = smov 0   ;;  %s1946_s17 = smov 0  }
   0x5   :  { %s1948_s18 = smov 0   ;;  %s1950_s19 = smov 0  }
   0x6 LB: > { %s1289_s20 = sadd.s32 4294967295, %s1906_s19   ;;  %s1290_s21 = sadd.s32 4294967294, %s1906_s19   ;;  %s1906_s19 = sphi %s1950_s19, %s17_s19   ;;  %s1902_s18 = sphi %s1948_s18, %s2330_s18   ;;  %s1898_s17 = sphi %s1946_s17, %s2329_s17   ;;  %s1894_s16 = sphi %s1944_s16, %s2328_s16   ;;  %s1890_s15 = sphi %s1942_s15, %s2327_s15   ;;  %s1886_s14 = sphi %s1940_s14, %s2326_s14   ;;  %s1882_s13 = sphi %s1938_s13, %s2325_s13   ;;  %s1878_s12 = sphi %s1936_s12, %s2324_s12  }
   0x7   : > { %s26_s22 = sadd.s32 1, %s1898_s17  ;;  %s29_s23 = sadd.s32 1, %s1902_s18 }
   0x8   : > { %p27_p0 = scmp.ge.s32.totalorder %s26_s22, 2  ;;  %s106_s24 = sadd.s32 1, %s1886_s14 }
   0x9   : > { %p116_p1 = scmp.ne.s32.totalorder %s1886_s14, %s1882_s13  ;;  %p117_p2 = scmp.eq.s32.totalorder %s1289_s20, 3 }
   0xa   : > { %s2332_s22 = smov (%p27_p0, %s26_s22), 0  ;;  %s2334_s23 = smov (!%p27_p0, %s29_s23), %s1902_s18 }
   0xb   : > { %s102_s25 = ssub.s32 %s1898_s17, %s2332_s22  ;;  %p1988_p3 = por %p117_p2, %p116_p1 }
   0xc   : > { %p31_p4 = scmp.ge.s32.totalorder %s2334_s23, 2  ;;  %p122_p5 = scmp.ne.s32.totalorder %s1882_s13, %s1878_s12 }
   0xd   : > { %p123_p6 = scmp.eq.s32.totalorder %s1290_s21, 3  ;;  %p1291_p7 = scmp.ge.s32.totalorder %s1906_s19, 1 }
   0xe   : > { %s2336_s23 = smov (%p31_p4, %s2334_s23), 0  ;;  %p130_p9 = scmp.lt.s32.totalorder %s1906_s19, 5 }
   0xf   : > { %p1997_p8 = por %p123_p6, %p122_p5  ;;  %s101_s28 = ssub.s32 %s1902_s18, %s2336_s23 }
  0x10   : > { %s103_s29 = sor.u32 %s102_s25, %s101_s28  ;;  %p2004_p10 = pnand %p1291_p7, %p130_p9 }
  0x11   : > { %p104_p11 = scmp.eq.s32.totalorder %s103_s29, 0  ;;  %p2008_p12 = scmp.eq.s32.totalorder %s1289_s20, 0 }
  0x12   : > { %p1702_p13 = pneg %p2004_p10  ;;  %s1908_s6 = smov [#allocation2]  }
  0x13   : > { %s2015_s5 = scalar_select %p104_p11, %s1886_s14, %s106_s24  }
  0x14   : > { %s142_s7 = sshll.u32 %s1908_s6, 4  ;;  %p2019_p0 = pnand %p2008_p12, %p1702_p13  ;;  %s143_s7 = int_to_ptr.vmem [resolvable:$true] %s142_s7 }
  0x15   : > { %s1795_s9 = scalar_lea.vmem %s143_s7, 9216  ;;  %p1803_p6 = scmp.lt.s32.totalorder %s143_s7, %s143_s7 }
  0x16   : > { %p1786_p1 = pneg %p2019_p0  ;;  %p1796_p2 = scmp.ne.s32.totalorder %s143_s7, %s1795_s9 }
  0x17   : > { %p1804_p7 = scmp.lt.s32.totalorder %s1795_s9, %s1795_s9 }
  0x18   : > { %p1798_p4 = pnand %p1796_p2, %p1786_p1 }
  0x19   : > { %p1805_p9 = por %p1804_p7, %p1803_p6 }
  0x1a   : > { %p1799_p5 = pneg %p1798_p4 }
  0x1c   : > { %p1806_p11 = pnand %p1805_p9, %p1799_p5 }
  0x1e   : > { %1809 = shalt.err (!%p1806_p11)
}
  0x1f   : > { %s1909_s10 = smov 128   ;;  %s1910_s11 = smov 8  }
  0x20   : > { %1705 = dma.hbm_to_vmem [thread:$0]  (!%p2019_p0), %s2316_s1, 9216, %s143_s7, [#allocation3], %s1909_s10, %s1909_s10, %s1910_s11  }
  0x21   : > { %169 = sbr.rel (%p2004_p10) target bundleno = 360 (0x168), region = 32 }
  0x26   : > { %1869 = dma.done.wait (%p2008_p12), [#allocation3], 9216  }
  0x27   : > { %1871 = vsyncadd (%p2008_p12), [#allocation3], 4294958080  ;;  %v1911_v0 = vmov 0.0   ;;  %vm1912_vm0 = vmmov 0   ;;  %p193_p10 = scmp.lt.s32.totalorder %s1894_s16, 1  ;;  %v224_v1 = vld [vmem:[#allocation2 + $0x78] sm:$0xff] }
  0x28   : > { %1451 = vmatprep.subr.mxu0 %v1911_v0  ;;  %1476 = vmatprep.subr.mxu1 %v1911_v0  ;;  %v210_v2 = vld [vmem:[#allocation2 + $0x38] sm:$0xff]  ;;  %v223_v3 = vld [vmem:[#allocation2 + $0x70] sm:$0xff]  ;;  %v222_v5 = vld [vmem:[#allocation2 + $0x68] sm:$0xff]  ;;  %s198_s28 = smul.u32 24, %s1890_s15  ;;  %vm225_vm1 = vcmask 523264   ;;  %s190_s7 = sand.u32 1, %s1882_s13  }
  0x29   : > { %1492 = vmatprep.mubr.msk.f32.mxu1 %vm1912_vm0, %v1911_v0  ;;  %1467 = vmatprep.mubr.msk.f32.mxu0 %vm1912_vm0, %v1911_v0  ;;  %s194_s24 = scalar_select %p193_p10, %s1894_s16, 1  ;;  %v209_v4 = vld [vmem:[#allocation2 + $0x30] sm:$0xff]  ;;  %v208_v6 = vld [vmem:[#allocation2 + $0x28] sm:$0xff]  ;;  %v221_v7 = vld [vmem:[#allocation2 + $0x60] sm:$0xff] }
  0x2a   : > { %1452 = vmatpush3.msra.mxu0 %v224_v1  ;;  %1477 = vmatpush3.msra.mxu1 %v210_v2  ;;  %v207_v8 = vld [vmem:[#allocation2 + $0x20] sm:$0xff]  ;;  %v220_v9 = vld [vmem:[#allocation2 + $0x58] sm:$0xff]  ;;  %v219_v11 = vld [vmem:[#allocation2 + $0x50] sm:$0xff]  ;;  %s1694_s8 = smul.u32 3, %s1890_s15  ;;  %s2264_s30 = scalar_lea.sflag [#allocation4], %s190_s7 }
  0x2b   : > { %1453 = vmatprep.subr.mxu0 %v1911_v0  ;;  %1478 = vmatprep.subr.mxu1 %v1911_v0  ;;  %s1693_s25 = smul.u32 72, %s194_s24  ;;  %v206_v10 = vld [vmem:[#allocation2 + $0x18] sm:$0xff]  ;;  %v205_v12 = vld [vmem:[#allocation2 + $0x10] sm:$0xff]  ;;  %v218_v13 = vld [vmem:[#allocation2 + $0x48] sm:$0xff] }
  0x2c   : > { %1454 = vmatpush3.msra.mxu0 %v223_v3  ;;  %1479 = vmatpush3.msra.mxu1 %v209_v4  ;;  %v204_v14 = vld [vmem:[#allocation2 + $0x8] sm:$0xff]  ;;  %v217_v15 = vld [vmem:[#allocation2 + $0x40] sm:$0xff]  ;;  %v417_v19 = vld [vmem:[#allocation2 + $0xb8] sm:$0xff]  ;;  %s1695_s9 = smul.u32 6, %s1894_s16 }
  0x2d   : > { %1455 = vmatprep.subr.mxu0 %v1911_v0  ;;  %1480 = vmatprep.subr.mxu1 %v1911_v0  ;;  %s197_s4 = scalar_lea.vmem %s2315_s0, %s1693_s25  ;;  %v203_v16 = vld [vmem:[#allocation2] sm:$0xff]  ;;  %v523_v20 = vld [vmem:[#allocation2 + $0xf8] sm:$0xff]  ;;  %v416_v21 = vld [vmem:[#allocation2 + $0xb0] sm:$0xff]  ;;  %s1692_s10 = smul.u32 24, %s190_s7 }
  0x2e   : > { %1456 = vmatpush3.msra.mxu0 %v222_v5  ;;  %1481 = vmatpush3.msra.mxu1 %v208_v6  ;;  %s2058_s6 = scalar_lea.vmem %s197_s4, %s198_s28  ;;  %v522_v22 = vld [vmem:[#allocation2 + $0xf0] sm:$0xff]  ;;  %v415_v23 = vld [vmem:[#allocation2 + $0xa8] sm:$0xff]  ;;  %v414_v26 = vld [vmem:[#allocation2 + $0xa0] sm:$0xff]  ;;  %s1172_s21 = sadd.s32 %s1695_s9, %s1694_s8 }
  0x2f   : > { %1457 = vmatprep.subr.mxu0 %v1911_v0  ;;  %1482 = vmatprep.subr.mxu1 %v1911_v0  ;;  %v200_v17 = vld [vmem:[%s2058_s6] sm:$0xff]  ;;  %v521_v24 = vld [vmem:[#allocation2 + $0xe8] sm:$0xff]  ;;  %v413_v29 = vld [vmem:[#allocation2 + $0x98] sm:$0xff]  ;;  %s192_s15 = scalar_lea.vmem [#allocation5], %s1692_s10  ;;  %s1349_s24 = sshll.u32 %s1172_s21, 7 }
  0x30   : > { %1458 = vmatpush3.msra.mxu0 %v221_v7  ;;  %1483 = vmatpush3.msra.mxu1 %v207_v8  ;;  %v1297_v18 = vld [vmem:[%s2058_s6 + $0x1] sm:$0xff]  ;;  %v2079_v28 = vld [vmem:[%s2058_s6 + $0x9] sm:$0xff]  ;;  %v519_v30 = vld [vmem:[#allocation2 + $0xd8] sm:$0xff]  ;;  %s1175_s16 = sshll.u32 %s192_s15, 4  ;;  %s2260_s29 = scalar_lea.hbm %s2318_s3, %s1349_s24  ;;  %s2255_s16 = int_to_ptr.vmem [resolvable:$true] %s1175_s16 }
  0x31   : > { %1459 = vmatprep.subr.mxu0 %v1911_v0  ;;  %1484 = vmatprep.subr.mxu1 %v1911_v0  ;;  %v201_v25 = vld [vmem:[%s2058_s6 + $0x8] sm:$0xff]  ;;  %v520_v27 = vld [vmem:[#allocation2 + $0xe0] sm:$0xff]  ;;  %v2090_v31 = vld [vmem:[%s2058_s6 + $0x10] sm:$0xff]  ;;  %s1810_s4 = scalar_lea.vmem %s2255_s16, 384 }
  0x32   : > { %1460 = vmatpush3.msra.mxu0 %v220_v9  ;;  %1485 = vmatpush3.msra.mxu1 %v206_v10  ;;  %v412_v32 = vld [vmem:[#allocation2 + $0x90] sm:$0xff]  ;;  %v411_v35 = vld [vmem:[#allocation2 + $0x88] sm:$0xff]  ;;  %v410_v37 = vld [vmem:[#allocation2 + $0x80] sm:$0xff]  ;;  %p1811_p12 = scmp.ne.s32.totalorder %s2255_s16, %s1810_s4 }
  0x33   : > { %1461 = vmatprep.subr.mxu0 %v1911_v0  ;;  %1486 = vmatprep.subr.mxu1 %v1911_v0  ;;  %v518_v33 = vld [vmem:[#allocation2 + $0xd0] sm:$0xff]  ;;  %v517_v36 = vld [vmem:[#allocation2 + $0xc8] sm:$0xff]  ;;  %v516_v38 = vld [vmem:[#allocation2 + $0xc0] sm:$0xff] }
  0x34   : > { %1462 = vmatpush3.msra.mxu0 %v219_v11  ;;  %1487 = vmatpush3.msra.mxu1 %v205_v12  ;;  %v2096_v34 = vld [vmem:[%s2058_s6 + $0x11] sm:$0xff]  ;;  %v1306_v39 = vld [vmem:[%s2058_s6 + $0x2] sm:$0xff]  ;;  %v1320_v4 = vld [vmem:[%s2058_s6 + $0x19] sm:$0xff]  ;;  %p1812_p13 = pnand %p1811_p12, %p1988_p3 }
  0x35   : > { %1463 = vmatprep.subr.mxu0 %v1911_v0  ;;  %1488 = vmatprep.subr.mxu1 %v1911_v0  ;;  %v629_v40 = vld [vmem:[#allocation2 + $0x138] sm:$0xff]  ;;  %v628_v42 = vld [vmem:[#allocation2 + $0x130] sm:$0xff]  ;;  %v627_v45 = vld [vmem:[#allocation2 + $0x128] sm:$0xff] }
  0x36   : > { %1464 = vmatpush3.msra.mxu0 %v218_v13  ;;  %1489 = vmatpush3.msra.mxu1 %v204_v14  ;;  %v735_v41 = vld [vmem:[#allocation2 + $0x178] sm:$0xff]  ;;  %v734_v43 = vld [vmem:[#allocation2 + $0x170] sm:$0xff]  ;;  %v733_v46 = vld [vmem:[#allocation2 + $0x168] sm:$0xff]  ;;  %p1813_p0 = pneg %p1812_p13 }
  0x37   : > { %1465 = vmatprep.subr.mxu0 %v1911_v0  ;;  %1490 = vmatprep.subr.mxu1 %v1911_v0  ;;  %v1307_v44 = vld [vmem:[%s2058_s6 + $0xa] sm:$0xff]  ;;  %v626_v47 = vld [vmem:[#allocation2 + $0x120] sm:$0xff]  ;;  %v2130_v49 = vld [vmem:[%s2058_s6 + $0x12] sm:$0xff] }
  0x38   : > { %1466 = vmatpush3.msra.mxu0 %v217_v15  ;;  %1491 = vmatpush3.msra.mxu1 %v203_v16  ;;  %v732_v48 = vld [vmem:[#allocation2 + $0x160] sm:$0xff]  ;;  %v625_v50 = vld [vmem:[#allocation2 + $0x118] sm:$0xff]  ;;  %v624_v53 = vld [vmem:[#allocation2 + $0x110] sm:$0xff] }
  0x39   : > { %1493 = vmatmul.mubr.msk.f32.vlgmr.msra.gmra.mxu1 %vm225_vm1, %v200_v17  ;;  %1501 = vmatprep.subr.mxu0 %v1911_v0  ;;  %v731_v51 = vld [vmem:[#allocation2 + $0x158] sm:$0xff]  ;;  %v730_v54 = vld [vmem:[#allocation2 + $0x150] sm:$0xff]  ;;  %v623_v55 = vld [vmem:[#allocation2 + $0x108] sm:$0xff] }
  0x3a   : > { %1526 = vmatprep.subr.mxu1 %v1911_v0  ;;  %1468 = vmatmul.mubr.msk.f32.vlgmr.msra.gmra.mxu0 %vm225_vm1, %v1297_v18  ;;  %v2142_v52 = vld [vmem:[%s2058_s6 + $0x18] sm:$0xff]  ;;  %v729_v56 = vld [vmem:[#allocation2 + $0x148] sm:$0xff]  ;;  %v622_v57 = vld [vmem:[#allocation2 + $0x100] sm:$0xff] }
  0x3b   : > { %1502 = vmatpush3.msra.mxu0 %v417_v19  ;;  %1527 = vmatpush3.msra.mxu1 %v523_v20  ;;  %v728_v58 = vld [vmem:[#allocation2 + $0x140] sm:$0xff]  ;;  %v841_v59 = vld [vmem:[#allocation2 + $0x1b8] sm:$0xff]  ;;  %v840_v61 = vld [vmem:[#allocation2 + $0x1b0] sm:$0xff] }
  0x3c   : > { %1503 = vmatprep.subr.mxu0 %v1911_v0  ;;  %1528 = vmatprep.subr.mxu1 %v1911_v0  ;;  %v947_v60 = vld [vmem:[#allocation2 + $0x1f8] sm:$0xff]  ;;  %v946_v62 = vld [vmem:[#allocation2 + $0x1f0] sm:$0xff]  ;;  %v839_v63 = vld [vmem:[#allocation2 + $0x1a8] sm:$0xff] }
  0x3d   : > { %1504 = vmatpush3.msra.mxu0 %v416_v21  ;;  %1529 = vmatpush3.msra.mxu1 %v522_v22  ;;  %v945_v1 = vld [vmem:[#allocation2 + $0x1e8] sm:$0xff]  ;;  %v838_v2 = vld [vmem:[#allocation2 + $0x1a0] sm:$0xff]  ;;  %v837_v5 = vld [vmem:[#allocation2 + $0x198] sm:$0xff] }
  0x3e   : > { %1505 = vmatprep.subr.mxu0 %v1911_v0  ;;  %1530 = vmatprep.subr.mxu1 %v1911_v0  ;;  %v944_v3 = vld [vmem:[#allocation2 + $0x1e0] sm:$0xff]  ;;  %v943_v6 = vld [vmem:[#allocation2 + $0x1d8] sm:$0xff]  ;;  %v836_v8 = vld [vmem:[#allocation2 + $0x190] sm:$0xff] }
  0x3f   : > { %1506 = vmatpush3.msra.mxu0 %v415_v23  ;;  %1531 = vmatpush3.msra.mxu1 %v521_v24  ;;  %v2184_v7 = vld [vmem:[%s2058_s6 + $0x1a] sm:$0xff]  ;;  %v942_v9 = vld [vmem:[#allocation2 + $0x1d0] sm:$0xff]  ;;  %v835_v10 = vld [vmem:[#allocation2 + $0x188] sm:$0xff] }
  0x40   : > { %1495 = vmatprep.mubr.msk.f32.mxu1 %vm1912_vm0, %v1911_v0  ;;  %1507 = vmatprep.subr.mxu0 %v1911_v0  ;;  %v941_v11 = vld [vmem:[#allocation2 + $0x1c8] sm:$0xff]  ;;  %v834_v12 = vld [vmem:[#allocation2 + $0x180] sm:$0xff]  ;;  %v1053_v14 = vld [vmem:[#allocation2 + $0x238] sm:$0xff] }
  0x41   : > { %1532 = vmatprep.subr.mxu1 %v1911_v0  ;;  %1470 = vmatprep.mubr.msk.f32.mxu0 %vm1912_vm0, %v1911_v0  ;;  %v940_v13 = vld [vmem:[#allocation2 + $0x1c0] sm:$0xff]  ;;  %v1052_v15 = vld [vmem:[#allocation2 + $0x230] sm:$0xff]  ;;  %v1051_v16 = vld [vmem:[#allocation2 + $0x228] sm:$0xff] }
  0x42   : > { %1496 = vmatmul.mubr.msk.f32.gmra.mxu1 %vm225_vm1, %v201_v25  ;;  %1508 = vmatpush3.msra.mxu0 %v414_v26  ;;  %v1050_v17 = vld [vmem:[#allocation2 + $0x220] sm:$0xff]  ;;  %v1049_v19 = vld [vmem:[#allocation2 + $0x218] sm:$0xff]  ;;  %v1048_v21 = vld [vmem:[#allocation2 + $0x210] sm:$0xff] }
  0x43   : > { %1533 = vmatpush3.msra.mxu1 %v520_v27  ;;  %1471 = vmatmul.mubr.msk.f32.gmra.mxu0 %vm225_vm1, %v2079_v28  ;;  %v1332_v18 = vld [vmem:[%s2058_s6 + $0x20] sm:$0xff]  ;;  %v1047_v22 = vld [vmem:[#allocation2 + $0x208] sm:$0xff] }
  0x44   : > { %1509 = vmatprep.subr.mxu0 %v1911_v0  ;;  %1534 = vmatprep.subr.mxu1 %v1911_v0  ;;  %v1338_v20 = vld [vmem:[%s2058_s6 + $0x21] sm:$0xff] }
  0x45   : > { %1510 = vmatpush3.msra.mxu0 %v413_v29  ;;  %1535 = vmatpush3.msra.mxu1 %v519_v30  ;;  %v1046_v23 = vld [vmem:[#allocation2 + $0x200] sm:$0xff] }
  0x46   : > { %1498 = vmatprep.mubr.msk.f32.mxu1 %vm1912_vm0, %v1911_v0  ;;  %1511 = vmatprep.subr.mxu0 %v1911_v0  ;;  %v1344_v24 = vld [vmem:[%s2058_s6 + $0x22] sm:$0xff]  ;;  %s1913_s6 = smov [#allocation5]  }
  0x47   : > { %1536 = vmatprep.subr.mxu1 %v1911_v0  ;;  %1473 = vmatprep.mubr.msk.f32.mxu0 %vm1912_vm0, %v1911_v0  ;;  %s1814_s8 = sshll.u32 %s1913_s6, 4  ;;  %s1815_s8 = int_to_ptr.vmem [resolvable:$false] %s1814_s8 }
  0x48   : > { %1499 = vmatmul.mubr.msk.f32.gmra.mxu1 %vm225_vm1, %v2090_v31  ;;  %1512 = vmatpush3.msra.mxu0 %v412_v32  ;;  %s1816_s9 = scalar_lea.vmem %s1815_s8, 768  ;;  %p1817_p1 = scmp.lt.s32.totalorder %s2255_s16, %s1815_s8 }
  0x49   : > { %1537 = vmatpush3.msra.mxu1 %v518_v33  ;;  %1474 = vmatmul.mubr.msk.f32.gmra.mxu0 %vm225_vm1, %v2096_v34  ;;  %p1818_p2 = scmp.lt.s32.totalorder %s1816_s9, %s1810_s4 }
  0x4a   : > { %1513 = vmatprep.subr.mxu0 %v1911_v0  ;;  %1538 = vmatprep.subr.mxu1 %v1911_v0 }
  0x4b   : > { %1514 = vmatpush3.msra.mxu0 %v411_v35  ;;  %1539 = vmatpush3.msra.mxu1 %v517_v36  ;;  %p1819_p4 = por %p1818_p2, %p1817_p1 }
  0x4c   : > { %1515 = vmatprep.subr.mxu0 %v1911_v0  ;;  %1540 = vmatprep.subr.mxu1 %v1911_v0 }
  0x4d   : > { %1516 = vmatpush3.msra.mxu0 %v410_v37  ;;  %1517 = vmatprep.mubr.msk.f32.mxu0 %vm1912_vm0, %v1911_v0  ;;  %p1820_p5 = pnand %p1819_p4, %p1813_p0 }
  0x4e   : > { %1541 = vmatpush3.msra.mxu1 %v516_v38  ;;  %1542 = vmatprep.mubr.msk.f32.mxu1 %vm1912_vm0, %v1911_v0 }
  0x4f   : > { %1518 = vmatmul.mubr.msk.f32.vlgmr.msra.gmra.mxu0 %vm225_vm1, %v1306_v39  ;;  %1543 = vmatmul.mubr.msk.f32.vlgmr.msra.gmra.mxu1 %vm225_vm1, %v201_v25 }
  0x50   : > { %1551 = vmatprep.subr.mxu0 %v1911_v0  ;;  %1576 = vmatprep.subr.mxu1 %v1911_v0 }
  0x51   : > { %1552 = vmatpush3.msra.mxu0 %v629_v40  ;;  %1577 = vmatpush3.msra.mxu1 %v735_v41 }
  0x52   : > { %1553 = vmatprep.subr.mxu0 %v1911_v0  ;;  %1578 = vmatprep.subr.mxu1 %v1911_v0 }
  0x53   : > { %1520 = vmatprep.mubr.msk.f32.mxu0 %vm1912_vm0, %v1911_v0  ;;  %1554 = vmatpush3.msra.mxu0 %v628_v42 }
  0x54   : > { %1579 = vmatpush3.msra.mxu1 %v734_v43  ;;  %1521 = vmatmul.mubr.msk.f32.gmra.mxu0 %vm225_vm1, %v1307_v44 }
  0x55   : > { %1555 = vmatprep.subr.mxu0 %v1911_v0  ;;  %1580 = vmatprep.subr.mxu1 %v1911_v0 }
  0x56   : > { %1545 = vmatprep.mubr.msk.f32.mxu1 %vm1912_vm0, %v1911_v0  ;;  %1556 = vmatpush3.msra.mxu0 %v627_v45 }
  0x57   : > { %1581 = vmatpush3.msra.mxu1 %v733_v46  ;;  %1557 = vmatprep.subr.mxu0 %v1911_v0 }
  0x58   : > { %1546 = vmatmul.mubr.msk.f32.gmra.mxu1 %vm225_vm1, %v2090_v31  ;;  %1582 = vmatprep.subr.mxu1 %v1911_v0 }
  0x59   : > { %1523 = vmatprep.mubr.msk.f32.mxu0 %vm1912_vm0, %v1911_v0  ;;  %1558 = vmatpush3.msra.mxu0 %v626_v47 }
  0x5a   : > { %1583 = vmatpush3.msra.mxu1 %v732_v48  ;;  %1524 = vmatmul.mubr.msk.f32.gmra.mxu0 %vm225_vm1, %v2130_v49 }
  0x5b   : > { %1559 = vmatprep.subr.mxu0 %v1911_v0  ;;  %1584 = vmatprep.subr.mxu1 %v1911_v0 }
  0x5c   : > { %1548 = vmatprep.mubr.msk.f32.mxu1 %vm1912_vm0, %v1911_v0  ;;  %1560 = vmatpush3.msra.mxu0 %v625_v50 }
  0x5d   : > { %1585 = vmatpush3.msra.mxu1 %v731_v51  ;;  %1561 = vmatprep.subr.mxu0 %v1911_v0 }
  0x5e   : > { %1549 = vmatmul.mubr.msk.f32.gmra.mxu1 %vm225_vm1, %v2142_v52  ;;  %1586 = vmatprep.subr.mxu1 %v1911_v0 }
  0x5f   : > { %1562 = vmatpush3.msra.mxu0 %v624_v53  ;;  %1587 = vmatpush3.msra.mxu1 %v730_v54 }
  0x60   : > { %1563 = vmatprep.subr.mxu0 %v1911_v0  ;;  %1588 = vmatprep.subr.mxu1 %v1911_v0 }
  0x61   : > { %1564 = vmatpush3.msra.mxu0 %v623_v55  ;;  %1589 = vmatpush3.msra.mxu1 %v729_v56 }
  0x62   : > { %1565 = vmatprep.subr.mxu0 %v1911_v0  ;;  %1590 = vmatprep.subr.mxu1 %v1911_v0 }
  0x63   : > { %1566 = vmatpush3.msra.mxu0 %v622_v57  ;;  %1567 = vmatprep.mubr.msk.f32.mxu0 %vm1912_vm0, %v1911_v0 }
  0x64   : > { %1591 = vmatpush3.msra.mxu1 %v728_v58  ;;  %1592 = vmatprep.mubr.msk.f32.mxu1 %vm1912_vm0, %v1911_v0 }
  0x65   : > { %1568 = vmatmul.mubr.msk.f32.vlgmr.msra.gmra.mxu0 %vm225_vm1, %v2079_v28  ;;  %1593 = vmatmul.mubr.msk.f32.vlgmr.msra.gmra.mxu1 %vm225_vm1, %v1307_v44 }
  0x66   : > { %1601 = vmatprep.subr.mxu0 %v1911_v0  ;;  %1626 = vmatprep.subr.mxu1 %v1911_v0 }
  0x67   : > { %1602 = vmatpush3.msra.mxu0 %v841_v59  ;;  %1627 = vmatpush3.msra.mxu1 %v947_v60 }
  0x68   : > { %1603 = vmatprep.subr.mxu0 %v1911_v0  ;;  %1628 = vmatprep.subr.mxu1 %v1911_v0 }
  0x69   : > { %1570 = vmatprep.mubr.msk.f32.mxu0 %vm1912_vm0, %v1911_v0  ;;  %1604 = vmatpush3.msra.mxu0 %v840_v61 }
  0x6a   : > { %1629 = vmatpush3.msra.mxu1 %v946_v62  ;;  %1571 = vmatmul.mubr.msk.f32.gmra.mxu0 %vm225_vm1, %v2096_v34 }
  0x6b   : > { %1605 = vmatprep.subr.mxu0 %v1911_v0  ;;  %1630 = vmatprep.subr.mxu1 %v1911_v0 }
  0x6c   : > { %1595 = vmatprep.mubr.msk.f32.mxu1 %vm1912_vm0, %v1911_v0  ;;  %1606 = vmatpush3.msra.mxu0 %v839_v63 }
  0x6d   : > { %1631 = vmatpush3.msra.mxu1 %v945_v1  ;;  %1607 = vmatprep.subr.mxu0 %v1911_v0 }
  0x6e   : > { %1596 = vmatmul.mubr.msk.f32.gmra.mxu1 %vm225_vm1, %v2130_v49  ;;  %1632 = vmatprep.subr.mxu1 %v1911_v0 }
  0x6f   : > { %1573 = vmatprep.mubr.msk.f32.mxu0 %vm1912_vm0, %v1911_v0  ;;  %1608 = vmatpush3.msra.mxu0 %v838_v2 }
  0x70   : > { %1633 = vmatpush3.msra.mxu1 %v944_v3  ;;  %1574 = vmatmul.mubr.msk.f32.gmra.mxu0 %vm225_vm1, %v1320_v4 }
  0x71   : > { %1609 = vmatprep.subr.mxu0 %v1911_v0  ;;  %1634 = vmatprep.subr.mxu1 %v1911_v0 }
  0x72   : > { %1598 = vmatprep.mubr.msk.f32.mxu1 %vm1912_vm0, %v1911_v0  ;;  %1610 = vmatpush3.msra.mxu0 %v837_v5 }
  0x73   : > { %1635 = vmatpush3.msra.mxu1 %v943_v6  ;;  %1611 = vmatprep.subr.mxu0 %v1911_v0 }
  0x74   : > { %1599 = vmatmul.mubr.msk.f32.gmra.mxu1 %vm225_vm1, %v2184_v7  ;;  %1636 = vmatprep.subr.mxu1 %v1911_v0 }
  0x75   : > { %1612 = vmatpush3.msra.mxu0 %v836_v8  ;;  %1637 = vmatpush3.msra.mxu1 %v942_v9 }
  0x76   : > { %1613 = vmatprep.subr.mxu0 %v1911_v0  ;;  %1638 = vmatprep.subr.mxu1 %v1911_v0 }
  0x77   : > { %1614 = vmatpush3.msra.mxu0 %v835_v10  ;;  %1639 = vmatpush3.msra.mxu1 %v941_v11 }
  0x78   : > { %1615 = vmatprep.subr.mxu0 %v1911_v0  ;;  %1640 = vmatprep.subr.mxu1 %v1911_v0 }
  0x79   : > { %1616 = vmatpush3.msra.mxu0 %v834_v12  ;;  %1617 = vmatprep.mubr.msk.f32.mxu0 %vm1912_vm0, %v1911_v0 }
  0x7a   : > { %1641 = vmatpush3.msra.mxu1 %v940_v13  ;;  %1642 = vmatprep.mubr.msk.f32.mxu1 %vm1912_vm0, %v1911_v0 }
  0x7b   : > { %1618 = vmatmul.mubr.msk.f32.vlgmr.msra.gmra.mxu0 %vm225_vm1, %v2090_v31  ;;  %1643 = vmatmul.mubr.msk.f32.vlgmr.msra.gmra.mxu1 %vm225_vm1, %v2096_v34 }
  0x7c   : > { %1651 = vmatprep.subr.mxu0 %v1911_v0  ;;  %1676 = vmatprep.subr.mxu1 %v1911_v0 }
  0x7d   : > { %1652 = vmatpush3.msra.mxu0 %v1053_v14  ;;  %1684 = vmatpush3.msra.mxu1 %v1053_v14 }
  0x7e   : > { %1653 = vmatprep.subr.mxu0 %v1911_v0  ;;  %1677 = vmatprep.subr.mxu1 %v1911_v0 }
  0x7f   : > { %1620 = vmatprep.mubr.msk.f32.mxu0 %vm1912_vm0, %v1911_v0  ;;  %1654 = vmatpush3.msra.mxu0 %v1052_v15 }
  0x80   : > { %1685 = vmatpush3.msra.mxu1 %v1052_v15  ;;  %1621 = vmatmul.mubr.msk.f32.gmra.mxu0 %vm225_vm1, %v2142_v52 }
  0x81   : > { %1655 = vmatprep.subr.mxu0 %v1911_v0  ;;  %1678 = vmatprep.subr.mxu1 %v1911_v0 }
  0x82   : > { %1645 = vmatprep.mubr.msk.f32.mxu1 %vm1912_vm0, %v1911_v0  ;;  %1656 = vmatpush3.msra.mxu0 %v1051_v16 }
  0x83   : > { %1686 = vmatpush3.msra.mxu1 %v1051_v16  ;;  %1657 = vmatprep.subr.mxu0 %v1911_v0 }
  0x84   : > { %1646 = vmatmul.mubr.msk.f32.gmra.mxu1 %vm225_vm1, %v1320_v4  ;;  %1679 = vmatprep.subr.mxu1 %v1911_v0 }
  0x85   : > { %1623 = vmatprep.mubr.msk.f32.mxu0 %vm1912_vm0, %v1911_v0  ;;  %1658 = vmatpush3.msra.mxu0 %v1050_v17 }
  0x86   : > { %1687 = vmatpush3.msra.mxu1 %v1050_v17  ;;  %1624 = vmatmul.mubr.msk.f32.gmra.mxu0 %vm225_vm1, %v1332_v18 }
  0x87   : > { %1659 = vmatprep.subr.mxu0 %v1911_v0  ;;  %1680 = vmatprep.subr.mxu1 %v1911_v0 }
  0x88   : > { %1648 = vmatprep.mubr.msk.f32.mxu1 %vm1912_vm0, %v1911_v0  ;;  %1660 = vmatpush3.msra.mxu0 %v1049_v19 }
  0x89   : > { %1688 = vmatpush3.msra.mxu1 %v1049_v19  ;;  %1661 = vmatprep.subr.mxu0 %v1911_v0 }
  0x8a   : > { %1649 = vmatmul.mubr.msk.f32.gmra.mxu1 %vm225_vm1, %v1338_v20  ;;  %1681 = vmatprep.subr.mxu1 %v1911_v0 }
  0x8b   : > { %1662 = vmatpush3.msra.mxu0 %v1048_v21  ;;  %1689 = vmatpush3.msra.mxu1 %v1048_v21 }
  0x8c   : > { %1663 = vmatprep.subr.mxu0 %v1911_v0  ;;  %1682 = vmatprep.subr.mxu1 %v1911_v0 }
  0x8d   : > { %1664 = vmatpush3.msra.mxu0 %v1047_v22  ;;  %1690 = vmatpush3.msra.mxu1 %v1047_v22 }
  0x8e   : > { %1665 = vmatprep.subr.mxu0 %v1911_v0  ;;  %1683 = vmatprep.subr.mxu1 %v1911_v0 }
  0x8f   : > { %1666 = vmatpush3.msra.mxu0 %v1046_v23  ;;  %1691 = vmatpush3.msra.mxu1 %v1046_v23 }
  0x90   : > { %1667 = vmatprep.mubr.msk.f32.mxu0 %vm1912_vm0, %v1911_v0  ;;  %1670 = vmatprep.mubr.msk.f32.mxu1 %vm1912_vm0, %v1911_v0 }
  0x91   : > { %1668 = vmatmul.mubr.msk.f32.vlgmr.msra.gmra.mxu0 %vm225_vm1, %v2130_v49  ;;  %1671 = vmatmul.mubr.msk.f32.vlgmr.msra.gmra.mxu1 %vm225_vm1, %v2184_v7 }
  0x92   : > { %1673 = vmatprep.mubr.msk.f32.mxu1 %vm1912_vm0, %v1911_v0 }
  0x95   : > { %1674 = vmatmul.mubr.msk.f32.gmra.mxu1 %vm225_vm1, %v1344_v24 }
  0xf9   : > { %v390_v25 = vpop.f32.mrf.mxu1 }
  0xfa   : > { %v301_v26 = vpop.f32.mrf.mxu0 }
  0xfb   : > { %v391_v27 = vadd.f32 %v390_v25, %v301_v26  ;;  %v1494_v28 = vpop.f32.mrf.mxu1 }
  0xfc   : > { %v1469_v29 = vpop.f32.mrf.mxu0 }
 0x102   : > { %v395_v30 = vpop.f32.mrf.mxu1 }
 0x103   : > { %v306_v31 = vpop.f32.mrf.mxu0 }
 0x104   : > { %v396_v32 = vadd.f32 %v395_v30, %v306_v31  ;;  %v1497_v33 = vpop.f32.mrf.mxu1  ;;  %v1348_v30 = vld [vmem:[%s2317_s2] ss:$0 sm:$0xff] }
 0x105   : > { %v1472_v34 = vpop.f32.mrf.mxu0 }
 0x108   : > { %v400_v35 = vpop.f32.mrf.mxu1 }
 0x109   : > { %v311_v36 = vpop.f32.mrf.mxu0 }
 0x10a   : > { %v1500_v37 = vpop.f32.mrf.mxu1  ;;  %v401_v6 = vadd.f32 %v400_v35, %v311_v36 }
 0x10b   : > { %v1475_v38 = vpop.f32.mrf.mxu0 }
 0x10f   : > { %v493_v39 = vpop.f32.mrf.mxu0  ;;  %v599_v40 = vpop.f32.mrf.mxu1 }
 0x110   : > { %v507_v3 = vadd.f32 %v493_v39, %v391_v27 }
 0x111   : > { %v1519_v0 = vpop.f32.mrf.mxu0  ;;  %v1544_v41 = vpop.f32.mrf.mxu1 }
 0x112   : > { %v613_v8 = vadd.f32 %v599_v40, %v507_v3 }
 0x114   : > { %v498_v42 = vpop.f32.mrf.mxu0 }
 0x115   : > { %v508_v4 = vadd.f32 %v498_v42, %v396_v32 }
 0x116   : > { %v1522_v43 = vpop.f32.mrf.mxu0 }
 0x118   : > { %v604_v44 = vpop.f32.mrf.mxu1 }
 0x119   : > { %v614_v9 = vadd.f32 %v604_v44, %v508_v4 }
 0x11a   : > { %v503_v45 = vpop.f32.mrf.mxu0  ;;  %v1547_v46 = vpop.f32.mrf.mxu1 }
 0x11b   : > { %v509_v10 = vadd.f32 %v503_v45, %v401_v6 }
 0x11c   : > { %v1525_v47 = vpop.f32.mrf.mxu0 }
 0x11e   : > { %v609_v48 = vpop.f32.mrf.mxu1 }
 0x11f   : > { %v615_v16 = vadd.f32 %v609_v48, %v509_v10 }
 0x120   : > { %v1550_v49 = vpop.f32.mrf.mxu1 }
 0x125   : > { %v705_v50 = vpop.f32.mrf.mxu0  ;;  %v811_v51 = vpop.f32.mrf.mxu1 }
 0x126   : > { %v719_v12 = vadd.f32 %v705_v50, %v613_v8 }
 0x127   : > { %v1569_v52 = vpop.f32.mrf.mxu0  ;;  %v1594_v53 = vpop.f32.mrf.mxu1 }
 0x128   : > { %v825_v18 = vadd.f32 %v811_v51, %v719_v12 }
 0x12a   : > { %v710_v54 = vpop.f32.mrf.mxu0 }
 0x12b   : > { %v720_v13 = vadd.f32 %v710_v54, %v614_v9 }
 0x12c   : > { %v1572_v55 = vpop.f32.mrf.mxu0 }
 0x12e   : > { %v816_v56 = vpop.f32.mrf.mxu1 }
 0x12f   : > { %v826_v19 = vadd.f32 %v816_v56, %v720_v13 }
 0x130   : > { %v715_v57 = vpop.f32.mrf.mxu0  ;;  %v1597_v58 = vpop.f32.mrf.mxu1 }
 0x131   : > { %v721_v20 = vadd.f32 %v715_v57, %v615_v16 }
 0x132   : > { %v1575_v59 = vpop.f32.mrf.mxu0 }
 0x134   : > { %v821_v60 = vpop.f32.mrf.mxu1 }
 0x135   : > { %v827_v25 = vadd.f32 %v821_v60, %v721_v20 }
 0x136   : > { %v1600_v61 = vpop.f32.mrf.mxu1 }
 0x13b   : > { %v917_v62 = vpop.f32.mrf.mxu0  ;;  %v1023_v63 = vpop.f32.mrf.mxu1 }
 0x13c   : > { %v931_v22 = vadd.f32 %v917_v62, %v825_v18 }
 0x13d   : > { %v1619_v1 = vpop.f32.mrf.mxu0  ;;  %v1644_v2 = vpop.f32.mrf.mxu1 }
 0x13e   : > { %v1037_v26 = vadd.f32 %v1023_v63, %v931_v22 }
 0x140   : > { %v922_v5 = vpop.f32.mrf.mxu0 }
 0x141   : > { %v932_v23 = vadd.f32 %v922_v5, %v826_v19 }
 0x142   : > { %v1622_v7 = vpop.f32.mrf.mxu0 }
 0x144   : > { %v1028_v11 = vpop.f32.mrf.mxu1 }
 0x145   : > { %v1038_v27 = vadd.f32 %v1028_v11, %v932_v23 }
 0x146   : > { %v927_v14 = vpop.f32.mrf.mxu0  ;;  %v1647_v15 = vpop.f32.mrf.mxu1 }
 0x147   : > { %v933_v28 = vadd.f32 %v927_v14, %v827_v25 }
 0x148   : > { %v1625_v17 = vpop.f32.mrf.mxu0 }
 0x14a   : > { %v1033_v21 = vpop.f32.mrf.mxu1 }
 0x14b   : > { %v1039_v36 = vadd.f32 %v1033_v21, %v933_v28 }
 0x14c   : > { %v1650_v24 = vpop.f32.mrf.mxu1 }
 0x151   : > { %v1129_v29 = vpop.f32.mrf.mxu0  ;;  %v1134_v31 = vpop.f32.mrf.mxu1 }
 0x152   : > { %v1143_v32 = vadd.f32 %v1129_v29, %v1037_v26  ;;  %v1144_v33 = vadd.f32 %v1134_v31, %v1038_v27 }
 0x153   : > { %v1672_v34 = vpop.f32.mrf.mxu1  ;;  %v1669_v35 = vpop.f32.mrf.mxu0 }
 0x154   : > { %v1153_v37 = vadd.f32 %v1348_v30, %v1143_v32  ;;  %v1154_v38 = vadd.f32 %v1348_v30, %v1144_v33 }
 0x155   : > { %v1139_v39 = vpop.f32.mrf.mxu1 }
 0x156   : > { %1156 = vst [vmem:[%s192_s15] sm:$0xff] %v1153_v37  ;;  %1157 = vst [vmem:[%s192_s15 + $0x8] sm:$0xff] %v1154_v38  ;;  %v1145_v40 = vadd.f32 %v1139_v39, %v1039_v36 }
 0x157   : > { %v1675_v0 = vpop.f32.mrf.mxu1 }
 0x158   : > { %v1155_v41 = vadd.f32 %v1348_v30, %v1145_v40 }
 0x15a   : > { %1158 = vst [vmem:[%s192_s15 + $0x10] sm:$0xff] %v1155_v41 }
 0x15b   : > { %1823 = shalt.err (!%p1820_p5)
}
 0x15c   : > { %s1824_s7 = scalar_lea.hbm %s2260_s29, 384  ;;  %s1828_s20 = scalar_lea.hbm %s2318_s3, 1536 }
 0x15d   : > { %p1825_p6 = scmp.ne.s32.totalorder %s2260_s29, %s1824_s7  ;;  %p1829_p11 = scmp.lt.s32.totalorder %s2260_s29, %s2318_s3 }
 0x15e   : > { %p1830_p10 = scmp.lt.s32.totalorder %s1828_s20, %s1824_s7 }
 0x15f   : > { %p1826_p7 = pnand %p1825_p6, %p1988_p3 }
 0x160   : > { %p1831_p12 = por %p1830_p10, %p1829_p11 }
 0x161   : > { %p1827_p9 = pneg %p1826_p7 }
 0x163   : > { %p1832_p13 = pnand %p1831_p12, %p1827_p9 }
 0x165   : > { %1835 = shalt.err (!%p1832_p13)
}
 0x166   : > { %s1914_s24 = smov 128   ;;  %s1915_s25 = smov 8  }
 0x167   : > { %1700 = dma.vmem_to_hbm [thread:$0]  (%p1988_p3), %s2255_s16, 384, %s2260_s29, %s2264_s30, %s1914_s24, %s1914_s24, %s1915_s25  }
 0x168 PF: > { %p1712_p0 = scmp.ge.s32.totalorder %s1906_s19, 2  ;;  %s1190_s28 = sand.u32 1, %s1878_s12  }
 0x169   : > { %s1191_s4 = scalar_lea.sflag [#allocation4], %s1190_s28 }
 0x16a   : > { %p1707_p1 = pnand %p1712_p0, %p1997_p8 }
 0x16c   : > { %p1708_p2 = pneg %p1707_p1 }
 0x16e   : > { %1873 = dma.done.wait (%p1708_p2), %s1191_s4, 384  }
 0x16f   : > { %1875 = vsyncadd (%p1708_p2), %s1191_s4, 4294966912  ;;  %s17_s19 = sadd.s32 1, %s1906_s19   ;;  %s2324_s12 = smov %s1882_s13 }
 0x170   : > { %p14_p4 = scmp.ge.s32.totalorder %s17_s19, 6   ;;  %s2325_s13 = smov %s1886_s14 }
 0x171   : > { %s2326_s14 = smov %s2015_s5  ;;  %s2327_s15 = smov %s1898_s17 }
 0x172   : > { %s2328_s16 = smov %s1902_s18  ;;  %s2329_s17 = smov %s2332_s22 }
 0x173   : > { %s2330_s18 = smov %s2336_s23  ;;  %16 = sbr.rel (!%p14_p4) target bundleno = 6 (0x6), region = 89 }
 0x178   :  { %1196 = vsyncpa [#allocation3], 1 }
 0x179   :  { %1198 = vsyncpa [#allocation3 + $0x1], 1 }
 0x17a   :  { %1199 = vsyncpa [#allocation4], 1 }
 0x17b   :  { %1201 = vsyncpa [#allocation4 + $0x1], 1 }

</bundles_post_ra>
